<compile_context>
chip_gen: v6e
topology: v6e:2x2x1
jax: 0.10.0
libtpu: 0.0.40
codegen_flags: <defaults>
</compile_context>

<pallas_src>
import functools

import jax
import jax.numpy as jnp
from jax.experimental import pallas as pl
from jax.experimental.pallas import tpu as pltpu


def _pdd_kernel(x_ref, k_ref, wq_ref, bq_ref, o_ref, *, num_heads, head_dim,
                compute_dtype):
    """One grid step = (one batch element, one N tile).

    x_ref  : (1, TN, C)          input tile, native dtype (cast in-kernel)
    k_ref  : (1, H, hd, M)       pre-projected, head-major, pre-transposed k
    wq_ref : (C, C)              q weight, pre-scaled by `scale`
    bq_ref : (1, C)              q bias,   pre-scaled by `scale`
    o_ref  : (1, H, TN, M)  or (1, TN, M) when num_heads == 1
    """
    x = x_ref[0].astype(compute_dtype)
    q = jnp.dot(x, wq_ref[...], preferred_element_type=jnp.float32)
    q = (q + bq_ref[...].astype(jnp.float32)).astype(compute_dtype)

    # Per-head scores: plain NN matmul on the MXU (k already (hd, M)).
    for h in range(num_heads):            # static unroll; num_heads is a Python int
        lo = h * head_dim
        qh = q[:, lo:lo + head_dim]       # (TN, hd)
        kh = k_ref[0, h]                  # (hd, M)
        scores = jnp.dot(qh, kh, preferred_element_type=jnp.float32)
        if num_heads == 1:
            o_ref[0] = scores.astype(o_ref.dtype)
        else:
            o_ref[0, h] = scores.astype(o_ref.dtype)


def _round_up(v, m):
    return (v + m - 1) // m * m


def _vmem_capacity_bytes():
    try:
        return int(pltpu.get_tpu_info().vmem_capacity_bytes)
    except Exception:
        return 64 * 1024 * 1024   # conservative: v7x has 64 MiB per TensorCore


def _estimate_vmem_bytes(tn, num_heads, head_dim, m, c,
                         x_itemsize, c_itemsize, out_itemsize):
    """Per-step VMEM footprint, padded to (8,128) tiles, double-buffered."""
    ru = _round_up
    x_b = 2 * ru(tn, 8) * ru(c, 128) * x_itemsize
    k_b = 2 * num_heads * ru(head_dim, 8) * ru(m, 128) * c_itemsize
    wq_b = 2 * ru(c, 8) * ru(c, 128) * c_itemsize
    bq_b = 2 * 8 * ru(c, 128) * c_itemsize
    o_b = 2 * num_heads * ru(tn, 8) * ru(m, 128) * out_itemsize
    # in-kernel temporaries: q (f32) + one head's f32 score tile
    tmp = ru(tn, 8) * ru(c, 128) * 4 + ru(tn, 8) * ru(m, 128) * 4
    return x_b + k_b + wq_b + bq_b + o_b + tmp


def _choose_n_tile(n, fits):
    """Budget-driven TN: full extent when small, else multiples of 256/128/8."""
    if n <= 512 and fits(n):          # full extent is always a legal block dim
        return n
    for g in (256, 128, 8):           # 256: v6e/v7x MXU tiles; 128: v5e; 8: sublane
        t = (min(n, 1024) // g) * g
        while t >= g:
            if fits(t):
                return t
            t -= g
    return min(n, 8)


def project_dot_distance(x, y, wq, bq, wk, bk, *, num_heads, scale=None,
                         compute_dtype=jnp.float32, out_dtype=None,
                         n_block_size=None):
    """x: (B, N, C), y: (B, M, C); weights stored (C_in, C_out); biases (C,).

    Returns (B, H, N, M) scores, or (B, N, M) when num_heads == 1, matching the
    PyTorch ProjectDotDistance forward.  out_dtype=jnp.bfloat16 is the fast path
    (halves score writeback bytes); default f32 for strict parity.
    """
    B, N, C = x.shape
    By, M, Cy = y.shape
    if By != B or Cy != C:
        raise ValueError("x and y must share batch and channel dims")
    if C % num_heads != 0:
        raise ValueError("dim must be divisible by num_heads")
    head_dim = C // num_heads
    scale = float(scale) if scale is not None else head_dim ** (-0.5)
    out_dtype = jnp.float32 if out_dtype is None else out_dtype

    x_itemsize = jnp.dtype(x.dtype).itemsize
    c_itemsize = jnp.dtype(compute_dtype).itemsize
    out_itemsize = jnp.dtype(out_dtype).itemsize

    # ---- generation-aware tile + VMEM-limit selection -------------------------
    capacity = _vmem_capacity_bytes()
    budget = int(0.8 * capacity)

    def fits(tn):
        return _estimate_vmem_bytes(tn, num_heads, head_dim, M, C,
                                    x_itemsize, c_itemsize, out_itemsize) <= budget

    if n_block_size is not None:
        tn = int(n_block_size)
        if tn <= 0 or tn > N or (tn != N and tn % 8 != 0):
            raise ValueError(f"invalid N tile {tn} for N={N}")
    else:
        tn = _choose_n_tile(N, fits)
    n_tiles = pl.cdiv(N, tn)            # non-divisor N -> padded tail tile

    est = _estimate_vmem_bytes(tn, num_heads, head_dim, M, C,
                               x_itemsize, c_itemsize, out_itemsize)
    vmem_limit = int(min(max(2 * est, 32 * 1024 * 1024), int(0.95 * capacity)))

    # ---- wrapper-side prep ------------------------------------------------------
    # Fold the attention scale into the q projection once, so the kernel never
    # multiplies the (H, TN, M) score tiles on the VPU.
    f32 = jnp.float32
    wq_s = (wq.astype(f32) * scale).astype(compute_dtype)
    bq_s = (bq.astype(f32) * scale).reshape(1, C).astype(compute_dtype)

    # Hoisted k projection (plain XLA): (B, M, C) -> head-major, pre-transposed
    # (B, H, hd, M).  One small HBM round trip per batch, amortized over all N tiles.
    k = jnp.einsum("bmc,cd->bmd", y.astype(compute_dtype), wk.astype(compute_dtype),
                   preferred_element_type=jnp.float32)
    k = k + bk.astype(jnp.float32)
    k = k.reshape(B, M, num_heads, head_dim).transpose(0, 2, 3, 1)   # (B, H, hd, M)
    k = k.astype(compute_dtype)

    kernel = functools.partial(_pdd_kernel, num_heads=num_heads,
                               head_dim=head_dim, compute_dtype=compute_dtype)

    x_spec = pl.BlockSpec((1, tn, C), lambda b, n: (b, n, 0))
    k_spec = pl.BlockSpec((1, num_heads, head_dim, M), lambda b, n: (b, 0, 0, 0))
    wq_spec = pl.BlockSpec((C, C), lambda b, n: (0, 0))
    bq_spec = pl.BlockSpec((1, C), lambda b, n: (0, 0))

    if num_heads == 1:
        # Emit (B, N, M) directly -- no post-kernel squeeze copy.
        out_shape = jax.ShapeDtypeStruct((B, N, M), out_dtype)
        out_spec = pl.BlockSpec((1, tn, M), lambda b, n: (b, n, 0))
    else:
        out_shape = jax.ShapeDtypeStruct((B, num_heads, N, M), out_dtype)
        out_spec = pl.BlockSpec((1, num_heads, tn, M), lambda b, n: (b, 0, n, 0))

    cost = pl.CostEstimate(
        flops=2 * B * N * C * C + 2 * B * N * M * C,
        transcendentals=0,
        bytes_accessed=(x.size * x_itemsize
                        + B * num_heads * head_dim * M * c_itemsize
                        + (C * C + C) * c_itemsize
                        + B * num_heads * N * M * out_itemsize))

    return pl.pallas_call(
        kernel,
        out_shape=out_shape,
        grid=(B, n_tiles),
        in_specs=[x_spec, k_spec, wq_spec, bq_spec],
        out_specs=out_spec,
        compiler_params=pltpu.CompilerParams(
            # k is precomputed, so nothing carries across the N axis -> both grid
            # axes can shard across TensorCores (v7x megacore, even when B is small).
            dimension_semantics=("parallel", "parallel"),
            vmem_limit_bytes=vmem_limit),
        cost_estimate=cost,
    )(x, k, wq_s, bq_s)


def _reference(x, y, wq, bq, wk, bk, *, num_heads, scale=None):
    B, N, C = x.shape
    _, M, _ = y.shape
    hd = C // num_heads
    scale = scale if scale is not None else hd ** (-0.5)
    q = (x @ wq + bq).reshape(B, N, num_heads, hd).transpose(0, 2, 1, 3)
    k = (y @ wk + bk).reshape(B, M, num_heads, hd).transpose(0, 2, 1, 3)
    attn = jnp.einsum("bhnd,bhmd->bhnm", q, k) * scale
    if num_heads == 1:
        attn = attn[:, 0]
    return attn


if __name__ == "__main__":
    key = jax.random.PRNGKey(0)
    kx, ky, kwq, kbq, kwk, kbk = jax.random.split(key, 6)

    B, N, M, C = 2, 8, 8, 32
    num_heads = 8

    x = jax.random.normal(kx, (B, N, C), dtype=jnp.float32)
    y = jax.random.normal(ky, (B, M, C), dtype=jnp.float32)
    wq = jax.random.normal(kwq, (C, C), dtype=jnp.float32) * 0.02
    bq = jax.random.normal(kbq, (C,), dtype=jnp.float32) * 0.02
    wk = jax.random.normal(kwk, (C, C), dtype=jnp.float32) * 0.02
    bk = jax.random.normal(kbk, (C,), dtype=jnp.float32) * 0.02

    ref = _reference(x, y, wq, bq, wk, bk, num_heads=num_heads)

    # 1) f32 parity path.
    out_f32 = jax.block_until_ready(
        project_dot_distance(x, y, wq, bq, wk, bk, num_heads=num_heads))
    assert out_f32.shape == (B, num_heads, N, M)
    assert jnp.allclose(out_f32, ref, atol=1e-4, rtol=1e-4)

    # 2) bf16 compute + bf16 output (writeback-bound fast path on v5e/v6e).
    out_bf16 = jax.block_until_ready(
        project_dot_distance(x, y, wq, bq, wk, bk, num_heads=num_heads,
                             compute_dtype=jnp.bfloat16, out_dtype=jnp.bfloat16))
    assert jnp.allclose(out_bf16.astype(jnp.float32), ref, atol=1e-2, rtol=5e-2)

    # 3) N-tiled path (grid over N, both axes parallel).
    N2 = 16
    x2 = jax.random.normal(jax.random.PRNGKey(1), (B, N2, C), dtype=jnp.float32)
    ref2 = _reference(x2, y, wq, bq, wk, bk, num_heads=num_heads)
    out2 = jax.block_until_ready(
        project_dot_distance(x2, y, wq, bq, wk, bk, num_heads=num_heads,
                             n_block_size=8))
    assert jnp.allclose(out2, ref2, atol=1e-4, rtol=1e-4)

    # 4) non-divisor N: padded tail tile via pl.cdiv (per-row independence makes
    #    the padded rows harmless; their outputs are dropped on writeback).
    N3 = 20
    x3 = jax.random.normal(jax.random.PRNGKey(2), (B, N3, C), dtype=jnp.float32)
    ref3 = _reference(x3, y, wq, bq, wk, bk, num_heads=num_heads)
    out3 = jax.block_until_ready(
        project_dot_distance(x3, y, wq, bq, wk, bk, num_heads=num_heads,
                             n_block_size=16))
    assert out3.shape == (B, num_heads, N3, M)
    assert jnp.allclose(out3, ref3, atol=1e-4, rtol=1e-4)

    # 5) num_heads == 1 squeeze path: (B, N, M) emitted directly by the kernel.
    ref1 = _reference(x, y, wq, bq, wk, bk, num_heads=1)
    out1 = jax.block_until_ready(
        project_dot_distance(x, y, wq, bq, wk, bk, num_heads=1))
    assert out1.shape == (B, N, M)
    assert jnp.allclose(out1, ref1, atol=1e-4, rtol=1e-4)

    print("KERNEL_OK")
</pallas_src>

<mosaic_0001>
module attributes {stable_mosaic.version = 11 : i64} {
  func.func @_pdd_kernel(%arg0: i32, %arg1: i32, %arg2: memref<1x8x32xf32, #tpu.memory_space<vmem>>, %arg3: memref<1x8x4x8xf32, #tpu.memory_space<vmem>>, %arg4: memref<32x32xf32, #tpu.memory_space<vmem>>, %arg5: memref<1x32xf32, #tpu.memory_space<vmem>>, %arg6: memref<1x8x8x8xf32, #tpu.memory_space<vmem>>) attributes {dimension_semantics = [#tpu.dimension_semantics<parallel>, #tpu.dimension_semantics<parallel>], iteration_bounds = array<i64: 2, 1>, scalar_prefetch = 0 : i64, scratch_operands = 0 : i64, tpu.core_type = #tpu.core_type<tc>, window_params = [{transform_indices = @transform_0, window_bounds = array<i64: 1, 8, 32>}, {transform_indices = @transform_1, window_bounds = array<i64: 1, 8, 4, 8>}, {pipeline_mode = #tpu.pipeline_mode<synchronous>, transform_indices = @transform_2, window_bounds = array<i64: 32, 32>}, {pipeline_mode = #tpu.pipeline_mode<synchronous>, transform_indices = @transform_3, window_bounds = array<i64: 1, 32>}, {transform_indices = @transform_4, window_bounds = array<i64: 1, 8, 8, 8>}]} {
    %c0 = arith.constant 0 : index
    %c0_0 = arith.constant 0 : index
    %c0_1 = arith.constant 0 : index
    %0 = vector.load %arg2[%c0, %c0_0, %c0_1] : memref<1x8x32xf32, #tpu.memory_space<vmem>>, vector<1x8x32xf32>
    %1 = vector.shape_cast %0 : vector<1x8x32xf32> to vector<8x32xf32>
    %c0_2 = arith.constant 0 : index
    %c0_3 = arith.constant 0 : index
    %2 = vector.load %arg4[%c0_2, %c0_3] : memref<32x32xf32, #tpu.memory_space<vmem>>, vector<32x32xf32>
    %cst = arith.constant dense<0.000000e+00> : vector<8x32xf32>
    %3 = tpu.matmul %1, %2, %cst {dimension_numbers = #tpu.dot_dimension_numbers<[1], [0], [0], [1], [0, 0, 1, 1], [], []>} : vector<8x32xf32>, vector<32x32xf32>, vector<8x32xf32> -> vector<8x32xf32>
    %c0_4 = arith.constant 0 : index
    %c0_5 = arith.constant 0 : index
    %4 = vector.load %arg5[%c0_4, %c0_5] : memref<1x32xf32, #tpu.memory_space<vmem>>, vector<1x32xf32>
    %5 = vector.broadcast %4 : vector<1x32xf32> to vector<8x32xf32>
    %6 = arith.addf %3, %5 : vector<8x32xf32>
    %7 = vector.extract_strided_slice %6 {offsets = [0, 0], sizes = [8, 4], strides = [1, 1]} : vector<8x32xf32> to vector<8x4xf32>
    %c0_6 = arith.constant 0 : index
    %c0_7 = arith.constant 0 : index
    %c0_8 = arith.constant 0 : index
    %c0_9 = arith.constant 0 : index
    %8 = vector.load %arg3[%c0_6, %c0_7, %c0_8, %c0_9] : memref<1x8x4x8xf32, #tpu.memory_space<vmem>>, vector<1x1x4x8xf32>
    %9 = vector.shape_cast %8 : vector<1x1x4x8xf32> to vector<4x8xf32>
    %cst_10 = arith.constant dense<0.000000e+00> : vector<8x8xf32>
    %10 = tpu.matmul %7, %9, %cst_10 {dimension_numbers = #tpu.dot_dimension_numbers<[1], [0], [0], [1], [0, 0, 1, 1], [], []>} : vector<8x4xf32>, vector<4x8xf32>, vector<8x8xf32> -> vector<8x8xf32>
    %c0_11 = arith.constant 0 : index
    %c0_12 = arith.constant 0 : index
    %c0_13 = arith.constant 0 : index
    %c0_14 = arith.constant 0 : index
    %11 = vector.load %arg6[%c0_11, %c0_12, %c0_13, %c0_14] : memref<1x8x8x8xf32, #tpu.memory_space<vmem>>, vector<1x1x8x8xf32>
    %12 = vector.shape_cast %11 : vector<1x1x8x8xf32> to vector<8x8xf32>
    %13 = vector.shape_cast %10 : vector<8x8xf32> to vector<1x1x8x8xf32>
    tpu.vector_store %arg6[%c0_11, %c0_12, %c0_13, %c0_14], %13 {strides = array<i32>} : memref<1x8x8x8xf32, #tpu.memory_space<vmem>>, vector<1x1x8x8xf32>,
    %14 = vector.extract_strided_slice %6 {offsets = [0, 4], sizes = [8, 4], strides = [1, 1]} : vector<8x32xf32> to vector<8x4xf32>
    %c0_15 = arith.constant 0 : index
    %c1 = arith.constant 1 : index
    %c0_16 = arith.constant 0 : index
    %c0_17 = arith.constant 0 : index
    %15 = vector.load %arg3[%c0_15, %c1, %c0_16, %c0_17] : memref<1x8x4x8xf32, #tpu.memory_space<vmem>>, vector<1x1x4x8xf32>
    %16 = vector.shape_cast %15 : vector<1x1x4x8xf32> to vector<4x8xf32>
    %cst_18 = arith.constant dense<0.000000e+00> : vector<8x8xf32>
    %17 = tpu.matmul %14, %16, %cst_18 {dimension_numbers = #tpu.dot_dimension_numbers<[1], [0], [0], [1], [0, 0, 1, 1], [], []>} : vector<8x4xf32>, vector<4x8xf32>, vector<8x8xf32> -> vector<8x8xf32>
    %c0_19 = arith.constant 0 : index
    %c1_20 = arith.constant 1 : index
    %c0_21 = arith.constant 0 : index
    %c0_22 = arith.constant 0 : index
    %18 = vector.load %arg6[%c0_19, %c1_20, %c0_21, %c0_22] : memref<1x8x8x8xf32, #tpu.memory_space<vmem>>, vector<1x1x8x8xf32>
    %19 = vector.shape_cast %18 : vector<1x1x8x8xf32> to vector<8x8xf32>
    %20 = vector.shape_cast %17 : vector<8x8xf32> to vector<1x1x8x8xf32>
    tpu.vector_store %arg6[%c0_19, %c1_20, %c0_21, %c0_22], %20 {strides = array<i32>} : memref<1x8x8x8xf32, #tpu.memory_space<vmem>>, vector<1x1x8x8xf32>,
    %21 = vector.extract_strided_slice %6 {offsets = [0, 8], sizes = [8, 4], strides = [1, 1]} : vector<8x32xf32> to vector<8x4xf32>
    %c0_23 = arith.constant 0 : index
    %c2 = arith.constant 2 : index
    %c0_24 = arith.constant 0 : index
    %c0_25 = arith.constant 0 : index
    %22 = vector.load %arg3[%c0_23, %c2, %c0_24, %c0_25] : memref<1x8x4x8xf32, #tpu.memory_space<vmem>>, vector<1x1x4x8xf32>
    %23 = vector.shape_cast %22 : vector<1x1x4x8xf32> to vector<4x8xf32>
    %cst_26 = arith.constant dense<0.000000e+00> : vector<8x8xf32>
    %24 = tpu.matmul %21, %23, %cst_26 {dimension_numbers = #tpu.dot_dimension_numbers<[1], [0], [0], [1], [0, 0, 1, 1], [], []>} : vector<8x4xf32>, vector<4x8xf32>, vector<8x8xf32> -> vector<8x8xf32>
    %c0_27 = arith.constant 0 : index
    %c2_28 = arith.constant 2 : index
    %c0_29 = arith.constant 0 : index
    %c0_30 = arith.constant 0 : index
    %25 = vector.load %arg6[%c0_27, %c2_28, %c0_29, %c0_30] : memref<1x8x8x8xf32, #tpu.memory_space<vmem>>, vector<1x1x8x8xf32>
    %26 = vector.shape_cast %25 : vector<1x1x8x8xf32> to vector<8x8xf32>
    %27 = vector.shape_cast %24 : vector<8x8xf32> to vector<1x1x8x8xf32>
    tpu.vector_store %arg6[%c0_27, %c2_28, %c0_29, %c0_30], %27 {strides = array<i32>} : memref<1x8x8x8xf32, #tpu.memory_space<vmem>>, vector<1x1x8x8xf32>,
    %28 = vector.extract_strided_slice %6 {offsets = [0, 12], sizes = [8, 4], strides = [1, 1]} : vector<8x32xf32> to vector<8x4xf32>
    %c0_31 = arith.constant 0 : index
    %c3 = arith.constant 3 : index
    %c0_32 = arith.constant 0 : index
    %c0_33 = arith.constant 0 : index
    %29 = vector.load %arg3[%c0_31, %c3, %c0_32, %c0_33] : memref<1x8x4x8xf32, #tpu.memory_space<vmem>>, vector<1x1x4x8xf32>
    %30 = vector.shape_cast %29 : vector<1x1x4x8xf32> to vector<4x8xf32>
    %cst_34 = arith.constant dense<0.000000e+00> : vector<8x8xf32>
    %31 = tpu.matmul %28, %30, %cst_34 {dimension_numbers = #tpu.dot_dimension_numbers<[1], [0], [0], [1], [0, 0, 1, 1], [], []>} : vector<8x4xf32>, vector<4x8xf32>, vector<8x8xf32> -> vector<8x8xf32>
    %c0_35 = arith.constant 0 : index
    %c3_36 = arith.constant 3 : index
    %c0_37 = arith.constant 0 : index
    %c0_38 = arith.constant 0 : index
    %32 = vector.load %arg6[%c0_35, %c3_36, %c0_37, %c0_38] : memref<1x8x8x8xf32, #tpu.memory_space<vmem>>, vector<1x1x8x8xf32>
    %33 = vector.shape_cast %32 : vector<1x1x8x8xf32> to vector<8x8xf32>
    %34 = vector.shape_cast %31 : vector<8x8xf32> to vector<1x1x8x8xf32>
    tpu.vector_store %arg6[%c0_35, %c3_36, %c0_37, %c0_38], %34 {strides = array<i32>} : memref<1x8x8x8xf32, #tpu.memory_space<vmem>>, vector<1x1x8x8xf32>,
    %35 = vector.extract_strided_slice %6 {offsets = [0, 16], sizes = [8, 4], strides = [1, 1]} : vector<8x32xf32> to vector<8x4xf32>
    %c0_39 = arith.constant 0 : index
    %c4 = arith.constant 4 : index
    %c0_40 = arith.constant 0 : index
    %c0_41 = arith.constant 0 : index
    %36 = vector.load %arg3[%c0_39, %c4, %c0_40, %c0_41] : memref<1x8x4x8xf32, #tpu.memory_space<vmem>>, vector<1x1x4x8xf32>
    %37 = vector.shape_cast %36 : vector<1x1x4x8xf32> to vector<4x8xf32>
    %cst_42 = arith.constant dense<0.000000e+00> : vector<8x8xf32>
    %38 = tpu.matmul %35, %37, %cst_42 {dimension_numbers = #tpu.dot_dimension_numbers<[1], [0], [0], [1], [0, 0, 1, 1], [], []>} : vector<8x4xf32>, vector<4x8xf32>, vector<8x8xf32> -> vector<8x8xf32>
    %c0_43 = arith.constant 0 : index
    %c4_44 = arith.constant 4 : index
    %c0_45 = arith.constant 0 : index
    %c0_46 = arith.constant 0 : index
    %39 = vector.load %arg6[%c0_43, %c4_44, %c0_45, %c0_46] : memref<1x8x8x8xf32, #tpu.memory_space<vmem>>, vector<1x1x8x8xf32>
    %40 = vector.shape_cast %39 : vector<1x1x8x8xf32> to vector<8x8xf32>
    %41 = vector.shape_cast %38 : vector<8x8xf32> to vector<1x1x8x8xf32>
    tpu.vector_store %arg6[%c0_43, %c4_44, %c0_45, %c0_46], %41 {strides = array<i32>} : memref<1x8x8x8xf32, #tpu.memory_space<vmem>>, vector<1x1x8x8xf32>,
    %42 = vector.extract_strided_slice %6 {offsets = [0, 20], sizes = [8, 4], strides = [1, 1]} : vector<8x32xf32> to vector<8x4xf32>
    %c0_47 = arith.constant 0 : index
    %c5 = arith.constant 5 : index
    %c0_48 = arith.constant 0 : index
    %c0_49 = arith.constant 0 : index
    %43 = vector.load %arg3[%c0_47, %c5, %c0_48, %c0_49] : memref<1x8x4x8xf32, #tpu.memory_space<vmem>>, vector<1x1x4x8xf32>
    %44 = vector.shape_cast %43 : vector<1x1x4x8xf32> to vector<4x8xf32>
    %cst_50 = arith.constant dense<0.000000e+00> : vector<8x8xf32>
    %45 = tpu.matmul %42, %44, %cst_50 {dimension_numbers = #tpu.dot_dimension_numbers<[1], [0], [0], [1], [0, 0, 1, 1], [], []>} : vector<8x4xf32>, vector<4x8xf32>, vector<8x8xf32> -> vector<8x8xf32>
    %c0_51 = arith.constant 0 : index
    %c5_52 = arith.constant 5 : index
    %c0_53 = arith.constant 0 : index
    %c0_54 = arith.constant 0 : index
    %46 = vector.load %arg6[%c0_51, %c5_52, %c0_53, %c0_54] : memref<1x8x8x8xf32, #tpu.memory_space<vmem>>, vector<1x1x8x8xf32>
    %47 = vector.shape_cast %46 : vector<1x1x8x8xf32> to vector<8x8xf32>
    %48 = vector.shape_cast %45 : vector<8x8xf32> to vector<1x1x8x8xf32>
    tpu.vector_store %arg6[%c0_51, %c5_52, %c0_53, %c0_54], %48 {strides = array<i32>} : memref<1x8x8x8xf32, #tpu.memory_space<vmem>>, vector<1x1x8x8xf32>,
    %49 = vector.extract_strided_slice %6 {offsets = [0, 24], sizes = [8, 4], strides = [1, 1]} : vector<8x32xf32> to vector<8x4xf32>
    %c0_55 = arith.constant 0 : index
    %c6 = arith.constant 6 : index
    %c0_56 = arith.constant 0 : index
    %c0_57 = arith.constant 0 : index
    %50 = vector.load %arg3[%c0_55, %c6, %c0_56, %c0_57] : memref<1x8x4x8xf32, #tpu.memory_space<vmem>>, vector<1x1x4x8xf32>
    %51 = vector.shape_cast %50 : vector<1x1x4x8xf32> to vector<4x8xf32>
    %cst_58 = arith.constant dense<0.000000e+00> : vector<8x8xf32>
    %52 = tpu.matmul %49, %51, %cst_58 {dimension_numbers = #tpu.dot_dimension_numbers<[1], [0], [0], [1], [0, 0, 1, 1], [], []>} : vector<8x4xf32>, vector<4x8xf32>, vector<8x8xf32> -> vector<8x8xf32>
    %c0_59 = arith.constant 0 : index
    %c6_60 = arith.constant 6 : index
    %c0_61 = arith.constant 0 : index
    %c0_62 = arith.constant 0 : index
    %53 = vector.load %arg6[%c0_59, %c6_60, %c0_61, %c0_62] : memref<1x8x8x8xf32, #tpu.memory_space<vmem>>, vector<1x1x8x8xf32>
    %54 = vector.shape_cast %53 : vector<1x1x8x8xf32> to vector<8x8xf32>
    %55 = vector.shape_cast %52 : vector<8x8xf32> to vector<1x1x8x8xf32>
    tpu.vector_store %arg6[%c0_59, %c6_60, %c0_61, %c0_62], %55 {strides = array<i32>} : memref<1x8x8x8xf32, #tpu.memory_space<vmem>>, vector<1x1x8x8xf32>,
    %56 = vector.extract_strided_slice %6 {offsets = [0, 28], sizes = [8, 4], strides = [1, 1]} : vector<8x32xf32> to vector<8x4xf32>
    %c0_63 = arith.constant 0 : index
    %c7 = arith.constant 7 : index
    %c0_64 = arith.constant 0 : index
    %c0_65 = arith.constant 0 : index
    %57 = vector.load %arg3[%c0_63, %c7, %c0_64, %c0_65] : memref<1x8x4x8xf32, #tpu.memory_space<vmem>>, vector<1x1x4x8xf32>
    %58 = vector.shape_cast %57 : vector<1x1x4x8xf32> to vector<4x8xf32>
    %cst_66 = arith.constant dense<0.000000e+00> : vector<8x8xf32>
    %59 = tpu.matmul %56, %58, %cst_66 {dimension_numbers = #tpu.dot_dimension_numbers<[1], [0], [0], [1], [0, 0, 1, 1], [], []>} : vector<8x4xf32>, vector<4x8xf32>, vector<8x8xf32> -> vector<8x8xf32>
    %c0_67 = arith.constant 0 : index
    %c7_68 = arith.constant 7 : index
    %c0_69 = arith.constant 0 : index
    %c0_70 = arith.constant 0 : index
    %60 = vector.load %arg6[%c0_67, %c7_68, %c0_69, %c0_70] : memref<1x8x8x8xf32, #tpu.memory_space<vmem>>, vector<1x1x8x8xf32>
    %61 = vector.shape_cast %60 : vector<1x1x8x8xf32> to vector<8x8xf32>
    %62 = vector.shape_cast %59 : vector<8x8xf32> to vector<1x1x8x8xf32>
    tpu.vector_store %arg6[%c0_67, %c7_68, %c0_69, %c0_70], %62 {strides = array<i32>} : memref<1x8x8x8xf32, #tpu.memory_space<vmem>>, vector<1x1x8x8xf32>,
    return
  }
  func.func @transform_0(%arg0: i32, %arg1: i32) -> (i32, i32, i32) {
    %c0_i32 = arith.constant 0 : i32
    %c0_i32_0 = arith.constant 0 : i32
    return %arg0, %arg1, %c0_i32 : i32, i32, i32
  }
  func.func @transform_1(%arg0: i32, %arg1: i32) -> (i32, i32, i32, i32) {
    %c0_i32 = arith.constant 0 : i32
    %c0_i32_0 = arith.constant 0 : i32
    %c0_i32_1 = arith.constant 0 : i32
    %c0_i32_2 = arith.constant 0 : i32
    return %arg0, %c0_i32, %c0_i32_0, %c0_i32_1 : i32, i32, i32, i32
  }
  func.func @transform_2(%arg0: i32, %arg1: i32) -> (i32, i32) {
    %c0_i32 = arith.constant 0 : i32
    %c0_i32_0 = arith.constant 0 : i32
    %c0_i32_1 = arith.constant 0 : i32
    return %c0_i32, %c0_i32_0 : i32, i32
  }
  func.func @transform_3(%arg0: i32, %arg1: i32) -> (i32, i32) {
    %c0_i32 = arith.constant 0 : i32
    %c0_i32_0 = arith.constant 0 : i32
    %c0_i32_1 = arith.constant 0 : i32
    return %c0_i32, %c0_i32_0 : i32, i32
  }
  func.func @transform_4(%arg0: i32, %arg1: i32) -> (i32, i32, i32, i32) {
    %c0_i32 = arith.constant 0 : i32
    %c0_i32_0 = arith.constant 0 : i32
    %c0_i32_1 = arith.constant 0 : i32
    return %arg0, %c0_i32, %arg1, %c0_i32_0 : i32, i32, i32, i32
  }
}

</mosaic_0001>

<bundles_post_ra>
// kernel: tpu_custom_call.1
= control target key start
LH: loop header
LB: loop body
LE: loop exit
PB: predicated region body
PF: predicated region fallthrough
CT: control target
= control target key end

     0   :  { %s1848_s0 = inlined_call_operand.hbm [shape: f32[2,8,32], index: 0, kind: input, shape index: {}]   ;;  %s1849_s1 = inlined_call_operand.hbm [shape: f32[2,8,4,8], index: 1, kind: input, shape index: {}]   ;;  %s1850_s2 = inlined_call_operand.hbm [shape: f32[32,32], index: 2, kind: input, shape index: {}]   ;;  %s1851_s3 = inlined_call_operand.vmem [shape: f32[1,32], index: 3, kind: input, shape index: {}]   ;;  %s1852_s4 = inlined_call_operand.hbm [shape: f32[2,8,8,8], index: 4, kind: output, shape index: {}]  }
   0x1   :  { %1855 = sst [smem:[#allocation15_spill]] %s1848_s0 }
   0x2   :  { %1856 = sst [smem:[#allocation16_spill]] %s1850_s2 }
   0x3   :  { %9 = vsyncpa [#allocation3], 0 }
   0x4   :  { %11 = vsyncpa [#allocation3 + $0x1], 0 }
   0x5   :  { %12 = vsyncpa [#allocation6], 0 }
   0x6   :  { %14 = vsyncpa [#allocation6 + $0x1], 0 }
   0x7   :  { %15 = vsyncpa [#allocation4], 0 }
   0x8   :  { %17 = vsyncpa [#allocation4 + $0x1], 0  ;;  %s1584_s15 = smov 0   ;;  %s1586_s16 = smov 0  }
   0x9   :  { %s1588_s17 = smov 0   ;;  %s1590_s18 = smov 0  }
   0xa   :  { %s1592_s19 = smov 0   ;;  %s1594_s20 = smov 0  }
   0xb LB: > { %1857 = sst [smem:[#allocation13_spill]] %s1534_s19  ;;  %s1615_s21 = sadd.s32 4294967295, %s1538_s20   ;;  %s1538_s20 = sphi %s1594_s20, %s23_s20   ;;  %s1534_s19 = sphi %s1592_s19, %s1871_s19   ;;  %s1530_s18 = sphi %s1590_s18, %s1870_s18   ;;  %s1526_s17 = sphi %s1588_s17, %s1874_s17   ;;  %s1522_s16 = sphi %s1586_s16, %s1873_s16   ;;  %s1518_s15 = sphi %s1584_s15, %s1872_s15  }
   0xc   : > { %s1150_s22 = sadd.s32 4294967294, %s1538_s20   ;;  %p57_p0 = scmp.ne.s32.totalorder %s1522_s16, %s1518_s15 }
   0xd   : > { %p58_p1 = scmp.eq.s32.totalorder %s1615_s21, 0  ;;  %p157_p3 = scmp.eq.s32.totalorder %s1150_s22, 1 }
   0xe   : > { %p1151_p5 = scmp.ge.s32.totalorder %s1538_s20, 1  ;;  %p164_p7 = scmp.lt.s32.totalorder %s1538_s20, 3 }
   0xf   : > { %p1624_p4 = por %p58_p1, %p57_p0  ;;  %p1629_p6 = por %p157_p3, %p57_p0 }
  0x10   : > { %p1634_p8 = pnand %p1151_p5, %p164_p7  ;;  %s1540_s26 = smov [#allocation7]  }
  0x11   : > { %s1859_s24 = scalar_select %p1629_p6, 1, 0 }
  0x12   : > { %s176_s27 = sshll.u32 %s1540_s26, 4  ;;  %p1285_p9 = pneg %p1634_p8  ;;  %s177_s27 = int_to_ptr.vmem [resolvable:$true] %s176_s27 }
  0x13   : > { %p1153_p10 = scmp.ge.s32.totalorder %s1538_s20, 2  ;;  %s35_s29 = sadd.s32 1, %s1534_s19 }
  0x14   : > { %p1643_p11 = pnand %p1285_p9, %p58_p1  ;;  %s1379_s30 = scalar_lea.vmem %s177_s27, 512 }
  0x15   : > { %p1380_p13 = scmp.ne.s32.totalorder %s177_s27, %s1379_s30  ;;  %p1387_p5 = scmp.lt.s32.totalorder %s177_s27, %s177_s27 }
  0x16   : > { %p1370_p12 = pneg %p1643_p11  ;;  %p1388_p7 = scmp.lt.s32.totalorder %s1379_s30, %s1379_s30 }
  0x18   : > { %p1382_p0 = pnand %p1380_p13, %p1370_p12  ;;  %p1389_p2 = por %p1388_p7, %p1387_p5 }
  0x1a   : > { %p1383_p3 = pneg %p1382_p0 }
  0x1c   : > { %p1390_p6 = pnand %p1389_p2, %p1383_p3 }
  0x1e   : > { %1393 = shalt.err (!%p1390_p6)
}
  0x1f   : > { %s1541_s5 = smov 128   ;;  %s1542_s6 = smov 8  }
  0x20   : > { %s1862_s2 = sld [smem:[#allocation16_spill]]  ;;  %p37_p2 = scmp.ge.s32.totalorder %s35_s29, 2 }
  0x21   : > { %s44_s9 = sadd.s32 1, %s1526_s17  ;;  %p51_p6 = scmp.ne.s32.totalorder %s1526_s17, %s1522_s16 }
  0x22   : > { %p52_p9 = scmp.eq.s32.totalorder %s1538_s20, 0  ;;  %s1876_s29 = smov (%p37_p2, %s35_s29), 0 }
  0x23   : > { %1863 = sst [smem:[#allocation14_spill]] %s1876_s29  ;;  %p1865_p13 = scmp.eq.s32.totalorder %s1615_s21, 1 }
  0x24   : > { %p1661_p12 = por %p52_p9, %p51_p6  ;;  %s39_s12 = ssub.s32 %s1534_s19, %s1876_s29 }
  0x25   : > { %p1667_p0 = por %p1865_p13, %p51_p6  ;;  %p42_p3 = scmp.eq.s32.totalorder %s39_s12, 0 }
  0x26   : > { %1288 = dma.hbm_to_vmem [thread:$0]  (!%p1643_p11), %s1862_s2, 512, %s177_s27, [#allocation6], %s1541_s5, %s1541_s5, %s1542_s6  }
  0x27   : > { %p1301_p11 = scmp.lt.s32.totalorder %s1538_s20, 2  ;;  %s193_s13 = sand.u32 1, %s1526_s17  }
  0x28   : > { %s1154_s14 = sshll.u32 %s193_s13, 3  ;;  %s1155_s26 = sshll.u32 %s1534_s19, 7 }
  0x29   : > { %s1676_s22 = scalar_select %p42_p3, %s1526_s17, %s44_s9  }
  0x2a   : > { %s1867_s0 = sld [smem:[#allocation15_spill]]  ;;  %s197_s5 = scalar_lea.vmem [#allocation2], %s1154_s14 }
  0x2b   : > { %s205_s6 = sshll.u32 %s197_s5, 4  ;;  %p1684_p5 = pnand %p1301_p11, %p1661_p12  ;;  %s206_s6 = int_to_ptr.vmem [resolvable:$true] %s205_s6 }
  0x2c   : > { %s1156_s8 = sshll.u32 %s193_s13, 5  ;;  %s1201_s12 = sshll.u32 %s1534_s19, 9 }
  0x2d   : > { %s194_s2 = scalar_lea.sflag [#allocation3], %s193_s13  ;;  %p1396_p7 = pneg %p1684_p5 }
  0x2e   : > { %s1407_s9 = scalar_lea.vmem %s206_s6, 128  ;;  %s1543_s14 = smov [#allocation2]  }
  0x2f   : > { %p1408_p2 = scmp.ne.s32.totalorder %s206_s6, %s1407_s9 }
  0x30   : > { %s203_s30 = scalar_lea.hbm %s1867_s0, %s1155_s26  ;;  %s1412_s26 = sshll.u32 %s1543_s14, 4  ;;  %s1413_s26 = int_to_ptr.vmem [resolvable:$false] %s1412_s26 }
  0x31   : > { %p1410_p6 = pnand %p1408_p2, %p1396_p7  ;;  %s1414_s10 = scalar_lea.vmem %s1413_s26, 256 }
  0x32   : > { %p1415_p12 = scmp.lt.s32.totalorder %s206_s6, %s1413_s26  ;;  %p1416_p13 = scmp.lt.s32.totalorder %s1414_s10, %s1407_s9 }
  0x33   : > { %p1411_p9 = pneg %p1410_p6 }
  0x34   : > { %p1417_p11 = por %p1416_p13, %p1415_p12 }
  0x36   : > { %p1418_p3 = pnand %p1417_p11, %p1411_p9 }
  0x38   : > { %1421 = shalt.err (!%p1418_p3)
}
  0x39   : > { %1292 = dma.hbm_to_vmem [thread:$0]  (!%p1684_p5), %s203_s30, 128, %s206_s6, %s194_s2  }
  0x3a   : > { %s216_s13 = scalar_lea.vmem [#allocation5], %s1156_s8  ;;  %s212_s28 = sand.u32 1, %s1538_s20  }
  0x3b   : > { %s223_s27 = sshll.u32 %s216_s13, 4  ;;  %s222_s14 = scalar_lea.hbm %s1849_s1, %s1201_s12  ;;  %s224_s27 = int_to_ptr.vmem [resolvable:$true] %s223_s27 }
  0x3c   : > { %s213_s29 = scalar_lea.sflag [#allocation6], %s212_s28  ;;  %s1435_s19 = scalar_lea.vmem %s224_s27, 512 }
  0x3d   : > { %p1436_p2 = scmp.ne.s32.totalorder %s224_s27, %s1435_s19  ;;  %s1544_s9 = smov [#allocation5]  }
  0x3e   : > { %s1440_s26 = sshll.u32 %s1544_s9, 4  ;;  %s1441_s26 = int_to_ptr.vmem [resolvable:$false] %s1440_s26 }
  0x3f   : > { %p1438_p6 = pnand %p1436_p2, %p1396_p7  ;;  %s1442_s10 = scalar_lea.vmem %s1441_s26, 1024 }
  0x40   : > { %p1443_p12 = scmp.lt.s32.totalorder %s224_s27, %s1441_s26  ;;  %p1444_p13 = scmp.lt.s32.totalorder %s1442_s10, %s1435_s19 }
  0x41   : > { %p1439_p9 = pneg %p1438_p6 }
  0x42   : > { %p1445_p11 = por %p1444_p13, %p1443_p12 }
  0x44   : > { %p1446_p3 = pnand %p1445_p11, %p1439_p9 }
  0x46   : > { %1449 = shalt.err (!%p1446_p3)
}
  0x47   : > { %s1545_s2 = smov 64   ;;  %s1546_s0 = smov 4  }
  0x48   : > { %1295 = dma.hbm_to_vmem [thread:$0]  (!%p1684_p5), %s222_s14, 512, %s224_s27, %s213_s29, %s1545_s2, %s1545_s2, %s1546_s0  }
  0x49   : > { %235 = sbr.rel (%p1634_p8) target bundleno = 624 (0x270), region = 36  ;;  %s1708_s30 = sand.u32 (!%p1634_p8), 1, %s1522_s16  }
  0x4a   : > { %s1160_s6 = sshll.u32 (!%p1634_p8), %s1708_s30, 3  ;;  %s238_s8 = scalar_lea.sflag (!%p1634_p8), [#allocation3], %s1708_s30 }
  0x4b   : > { %s241_s19 = scalar_lea.vmem (!%p1634_p8), [#allocation2], %s1160_s6 }
  0x4e   : > { %1501 = dma.done.wait (%p1624_p4), %s238_s8, 128  }
  0x4f   : > { %1503 = vsyncadd (%p1624_p4), %s238_s8, 4294967168  ;;  %s246_s29 = sand.u32 1, %s1615_s21   ;;  %s1161_s25 = sshll.u32 %s1708_s30, 5 }
  0x50   : > { %s247_s7 = scalar_lea.sflag [#allocation6], %s246_s29  ;;  %s1718_s12 = scalar_lea.vmem [#allocation5], %s1161_s25 }
  0x51   : > { %1505 = dma.done.wait (%p1624_p4), %s247_s7, 512  }
  0x52   : > { %1507 = vsyncadd (%p1624_p4), %s247_s7, 4294966784 }
  0x53   : > { %1509 = dma.done.wait (%p58_p1), [#allocation6], 512  }
  0x54   : > { %1511 = vsyncadd (%p58_p1), [#allocation6], 4294966784  ;;  %v1547_v0 = vmov 0.0   ;;  %vm1548_vm0 = vmmov 0   ;;  %v288_v1 = vld [vmem:[#allocation7 + $0x18] sm:$0xff]  ;;  %v287_v2 = vld [vmem:[#allocation7 + $0x10] sm:$0xff] }
  0x55   : > { %1224 = vmatprep.subr.mxu0 %v1547_v0  ;;  %1232 = vmatprep.mubr.msk.f32.mxu0 %vm1548_vm0, %v1547_v0  ;;  %v286_v3 = vld [vmem:[#allocation7 + $0x8] sm:$0xff]  ;;  %v285_v4 = vld [vmem:[#allocation7] sm:$0xff]  ;;  %v284_v5 = vld [vmem:[%s241_s19] sm:$0xff]  ;;  %vm296_vm1 = vcmask 261120   ;;  %vm375_vm2 = vcmask 1043456   ;;  %vm371_vm3 = vcmask 31744  }
  0x56   : > { %1235 = vmatprep.subr.mxu1 %v1547_v0  ;;  %1237 = vmatprep.mubr.msk.f32.mxu1 %vm1548_vm0, %v1547_v0  ;;  %v370_v6 = vld [vmem:[%s1718_s12] sm:$0xf]  ;;  %v1176_v7 = vld [vmem:[%s1718_s12 + $0xc] sm:$0xf]  ;;  %v1164_v8 = vld [vmem:[%s1851_s3] ss:$0 sm:$0xff] }
  0x57   : > { %1225 = vmatpush3.msra.mxu0 %v288_v1  ;;  %1236 = vmatpush3.msk.msra.mxu1 %vm375_vm2, %v370_v6  ;;  %v1168_v12 = vld [vmem:[%s1718_s12 + $0x4] sm:$0xf]  ;;  %s1549_s13 = smov 116   ;;  %s1550_s27 = smov 124   ;;  %v1172_v13 = vld [vmem:[%s1718_s12 + $0x8] sm:$0xf] }
  0x58   : > { %1226 = vmatprep.subr.mxu0 %v1547_v0  ;;  %1240 = vmatprep.subr.mxu1 %v1547_v0  ;;  %s1551_s28 = smov 112   ;;  %s1552_s5 = smov 120   ;;  %v1184_v16 = vld [vmem:[%s1718_s12 + $0x14] sm:$0xf]  ;;  %v1180_v17 = vld [vmem:[%s1718_s12 + $0x10] sm:$0xf] }
  0x59   : > { %1227 = vmatpush3.msra.mxu0 %v287_v2  ;;  %s1553_s14 = smov 104   ;;  %s1554_s9 = smov 108   ;;  %v1188_v20 = vld [vmem:[%s1718_s12 + $0x18] sm:$0xf]  ;;  %v1192_v21 = vld [vmem:[%s1718_s12 + $0x1c] sm:$0xf] }
  0x5a   : > { %1228 = vmatprep.subr.mxu0 %v1547_v0  ;;  %s1555_s26 = smov 100   ;;  %s1163_s10 = sshll.u32 %s1708_s30, 6  ;;  %vm449_vm4 = vcmask 64512  }
  0x5b   : > { %1229 = vmatpush3.msra.mxu0 %v286_v3  ;;  %s283_s2 = scalar_lea.vmem [#allocation8], %s1163_s10  ;;  %s1202_s6 = sshll.u32 %s1530_s18, 10 }
  0x5c   : > { %1230 = vmatprep.subr.mxu0 %v1547_v0  ;;  %s1033_s0 = sshll.u32 %s283_s2, 4  ;;  %s1798_s29 = scalar_lea.hbm %s1852_s4, %s1202_s6  ;;  %s1791_s0 = int_to_ptr.vmem [resolvable:$true] %s1033_s0 }
  0x5d   : > { %1231 = vmatpush3.msra.mxu0 %v285_v4  ;;  %s1019_s18 = scalar_lea.sflag [#allocation4], %s1708_s30  ;;  %s1450_s25 = scalar_lea.vmem %s1791_s0, 1024 }
  0x5e   : > { %1233 = vmatmul.mubr.msk.f32.vlgmr.msra.gmra.mxu0 %vm296_vm1, %v284_v5  ;;  %1250 = vmatprep.subr.mxu0 %v1547_v0  ;;  %p1451_p1 = scmp.ne.s32.totalorder %s1791_s0, %s1450_s25  ;;  %s1556_s7 = smov [#allocation8]  }
  0x5f   : > { %1252 = vmatprep.mubr.msk.f32.mxu0 %vm1548_vm0, %v1547_v0  ;;  %1251 = vmatpush3.msk.msra.mxu0 %vm375_vm2, %v1176_v7  ;;  %s1454_s12 = sshll.u32 %s1556_s7, 4  ;;  %s1455_s12 = int_to_ptr.vmem [resolvable:$false] %s1454_s12 }
  0x60   : > { %1260 = vmatprep.subr.mxu0 %v1547_v0  ;;  %p1452_p4 = pnand %p1451_p1, %p1667_p0  ;;  %s1456_s21 = scalar_lea.vmem %s1455_s12, 2048 }
  0x61   : > { %p1457_p5 = scmp.lt.s32.totalorder %s1791_s0, %s1455_s12  ;;  %p1458_p7 = scmp.lt.s32.totalorder %s1456_s21, %s1450_s25 }
  0x62   : > { %p1453_p8 = pneg %p1452_p4 }
  0x63   : > { %p1459_p2 = por %p1458_p7, %p1457_p5 }
  0x65   : > { %p1460_p6 = pnand %p1459_p2, %p1453_p8 }
 0x11e   : > { %v366_v9 = vpop.f32.mrf.mxu0 }
 0x11f   : > { %v367_v10 = vadd.f32 %v1164_v8, %v366_v9 }
 0x120   : > { %v1234_v11 = vpop.f32.mrf.mxu0 }
 0x121   : > { %615 = vrot.lane.b32.xlu1 %v367_v10, %s1549_s13  ;;  %453 = vrot.lane.b32.xlu0 %v367_v10, %s1550_s27 }
 0x122   : > { %1238 = vmatmul.mubr.msk.f32.vlgmr.msra.gmra.mxu1 %vm371_vm3, %v367_v10 }
 0x123   : > { %1241 = vmatpush3.msk.msra.mxu1 %vm375_vm2, %v1168_v12  ;;  %1242 = vmatprep.mubr.msk.f32.mxu1 %vm1548_vm0, %v1547_v0 }
 0x124   : > { %1245 = vmatprep.subr.mxu1 %v1547_v0 }
 0x125   : > { %696 = vrot.lane.b32.xlu1 %v367_v10, %s1551_s28  ;;  %534 = vrot.lane.b32.xlu0 %v367_v10, %s1552_s5 }
 0x129   : > { %858 = vrot.lane.b32.xlu1 %v367_v10, %s1553_s14  ;;  %777 = vrot.lane.b32.xlu0 %v367_v10, %s1554_s9 }
 0x12d   : > { %939 = vrot.lane.b32.xlu0 %v367_v10, %s1555_s26 }
 0x193   : > { %v616_v14 = vpop.permute.xlu1 %615  ;;  %v454_v15 = vpop.permute.xlu0 %453 }
 0x194   : > { %1243 = vmatmul.mubr.msk.f32.vlgmr.msra.gmra.mxu1 %vm371_vm3, %v454_v15  ;;  %1253 = vmatmul.mubr.msk.f32.vlgmr.msra.gmra.mxu0 %vm371_vm3, %v616_v14 }
 0x195   : > { %1246 = vmatpush3.msk.msra.mxu1 %vm375_vm2, %v1172_v13  ;;  %1247 = vmatprep.mubr.msk.f32.mxu1 %vm1548_vm0, %v1547_v0 }
 0x196   : > { %1255 = vmatprep.subr.mxu1 %v1547_v0  ;;  %1261 = vmatpush3.msk.msra.mxu0 %vm375_vm2, %v1184_v16 }
 0x197   : > { %v535_v18 = vpop.permute.xlu0 %534  ;;  %1262 = vmatprep.mubr.msk.f32.mxu0 %vm1548_vm0, %v1547_v0  ;;  %1270 = vmatprep.subr.mxu0 %v1547_v0  ;;  %v697_v19 = vpop.permute.xlu1 %696 }
 0x198   : > { %1248 = vmatmul.mubr.msk.f32.vlgmr.msra.gmra.mxu1 %vm371_vm3, %v535_v18 }
 0x199   : > { %1256 = vmatpush3.msk.msra.mxu1 %vm375_vm2, %v1180_v17  ;;  %1257 = vmatprep.mubr.msk.f32.mxu1 %vm1548_vm0, %v1547_v0 }
 0x19a   : > { %1265 = vmatprep.subr.mxu1 %v1547_v0 }
 0x19b   : > { %v778_v22 = vpop.permute.xlu0 %777  ;;  %v859_v23 = vpop.permute.xlu1 %858 }
 0x19c   : > { %1258 = vmatmul.mubr.msk.f32.vlgmr.msra.gmra.mxu1 %vm371_vm3, %v697_v19  ;;  %1263 = vmatmul.mubr.msk.f32.vlgmr.msra.gmra.mxu0 %vm371_vm3, %v778_v22 }
 0x19d   : > { %1266 = vmatpush3.msk.msra.mxu1 %vm375_vm2, %v1188_v20  ;;  %1271 = vmatpush3.msk.msra.mxu0 %vm375_vm2, %v1192_v21 }
 0x19e   : > { %1272 = vmatprep.mubr.msk.f32.mxu0 %vm1548_vm0, %v1547_v0  ;;  %1267 = vmatprep.mubr.msk.f32.mxu1 %vm1548_vm0, %v1547_v0 }
 0x19f   : > { %v940_v24 = vpop.permute.xlu0 %939 }
 0x1a0   : > { %1268 = vmatmul.mubr.msk.f32.vlgmr.msra.gmra.mxu1 %vm371_vm3, %v859_v23  ;;  %1273 = vmatmul.mubr.msk.f32.vlgmr.msra.gmra.mxu0 %vm371_vm3, %v940_v24 }
 0x1e2   : > { %v445_v25 = vpop.f32.mrf.mxu1 }
 0x1e3   : > { %450 = vst.msk [vmem:[%s283_s2] sm:$0xff] %vm449_vm4, %v445_v25 }
 0x1e4   : > { %v1239_v26 = vpop.f32.mrf.mxu1 }
 0x254   : > { %v526_v27 = vpop.f32.mrf.mxu1  ;;  %v688_v28 = vpop.f32.mrf.mxu0 }
 0x255   : > { %1171 = vst.msk [vmem:[%s283_s2 + $0x8] sm:$0xff] %vm449_vm4, %v526_v27  ;;  %1179 = vst.msk [vmem:[%s283_s2 + $0x18] sm:$0xff] %vm449_vm4, %v688_v28 }
 0x256   : > { %v1244_v29 = vpop.f32.mrf.mxu1  ;;  %v1254_v30 = vpop.f32.mrf.mxu0 }
 0x258   : > { %v607_v31 = vpop.f32.mrf.mxu1 }
 0x259   : > { %1175 = vst.msk [vmem:[%s283_s2 + $0x10] sm:$0xff] %vm449_vm4, %v607_v31 }
 0x25a   : > { %v1249_v32 = vpop.f32.mrf.mxu1 }
 0x25c   : > { %v769_v33 = vpop.f32.mrf.mxu1  ;;  %v850_v34 = vpop.f32.mrf.mxu0 }
 0x25d   : > { %1183 = vst.msk [vmem:[%s283_s2 + $0x20] sm:$0xff] %vm449_vm4, %v769_v33  ;;  %1187 = vst.msk [vmem:[%s283_s2 + $0x28] sm:$0xff] %vm449_vm4, %v850_v34 }
 0x25e   : > { %v1259_v35 = vpop.f32.mrf.mxu1  ;;  %v1264_v36 = vpop.f32.mrf.mxu0 }
 0x260   : > { %v931_v37 = vpop.f32.mrf.mxu1  ;;  %v1012_v38 = vpop.f32.mrf.mxu0 }
 0x261   : > { %1191 = vst.msk [vmem:[%s283_s2 + $0x30] sm:$0xff] %vm449_vm4, %v931_v37  ;;  %1195 = vst.msk [vmem:[%s283_s2 + $0x38] sm:$0xff] %vm449_vm4, %v1012_v38 }
 0x262   : > { %v1269_v39 = vpop.f32.mrf.mxu1  ;;  %v1274_v40 = vpop.f32.mrf.mxu0 }
 0x263   : > { %1463 = shalt.err (!%p1460_p6)
}
 0x264   : > { %s1464_s23 = scalar_lea.hbm %s1798_s29, 1024  ;;  %s1468_s28 = scalar_lea.hbm %s1852_s4, 2048 }
 0x265   : > { %p1465_p9 = scmp.ne.s32.totalorder %s1798_s29, %s1464_s23  ;;  %p1469_p11 = scmp.lt.s32.totalorder %s1798_s29, %s1852_s4 }
 0x266   : > { %p1470_p3 = scmp.lt.s32.totalorder %s1468_s28, %s1464_s23 }
 0x267   : > { %p1466_p12 = pnand %p1465_p9, %p1667_p0 }
 0x268   : > { %p1471_p1 = por %p1470_p3, %p1469_p11 }
 0x269   : > { %p1467_p13 = pneg %p1466_p12 }
 0x26b   : > { %p1472_p4 = pnand %p1471_p1, %p1467_p13 }
 0x26d   : > { %1475 = shalt.err (!%p1472_p4)
}
 0x26e   : > { %s1557_s9 = smov 128   ;;  %s1558_s26 = smov 8  }
 0x26f   : > { %1283 = dma.vmem_to_hbm [thread:$0]  (%p1667_p0), %s1791_s0, 1024, %s1798_s29, %s1019_s18, %s1557_s9, %s1557_s9, %s1558_s26  }
 0x270 PF: > { %s1048_s10 = sand.u32 1, %s1518_s15   ;;  %p1869_p8 = scmp.ne.s32.totalorder %s1859_s24, 0 }
 0x271   : > { %s1049_s2 = scalar_lea.sflag [#allocation4], %s1048_s10 }
 0x272   : > { %p1297_p5 = pnand %p1153_p10, %p1869_p8 }
 0x274   : > { %p1298_p7 = pneg %p1297_p5 }
 0x276   : > { %1513 = dma.done.wait (%p1298_p7), %s1049_s2, 1024  }
 0x277   : > { %1515 = vsyncadd (%p1298_p7), %s1049_s2, 4294966272  ;;  %s23_s20 = sadd.s32 1, %s1538_s20   ;;  %s1870_s18 = sld [smem:[#allocation13_spill]] }
 0x278   : > { %p20_p2 = scmp.ge.s32.totalorder %s23_s20, 4   ;;  %s1871_s19 = sld [smem:[#allocation14_spill]] }
 0x279   : > { %s1872_s15 = smov %s1522_s16  ;;  %s1873_s16 = smov %s1526_s17 }
 0x27a   : > { %s1874_s17 = smov %s1676_s22  ;;  %22 = sbr.rel (!%p20_p2) target bundleno = 11 (0xb), region = 112 }
 0x27f   :  { %1054 = vsyncpa [#allocation3], 1 }
 0x280   :  { %1056 = vsyncpa [#allocation3 + $0x1], 1 }
 0x281   :  { %1057 = vsyncpa [#allocation6], 1 }
 0x282   :  { %1059 = vsyncpa [#allocation6 + $0x1], 1 }
 0x283   :  { %1060 = vsyncpa [#allocation4], 1 }
 0x284   :  { %1062 = vsyncpa [#allocation4 + $0x1], 1 }

</bundles_post_ra>
